<compile_context>
chip_gen: v7x
topology: tpu7x:2x2x1
jax: 0.10.0
libtpu: 0.0.40
codegen_flags: <defaults>
</compile_context>

<pallas_src>
import numpy as np
import jax
import jax.numpy as jnp
from jax.experimental import pallas as pl
from jax.experimental.pallas import tpu as pltpu

BF16 = jnp.bfloat16
F32 = jnp.float32


def _dot(a, b):
    return jnp.dot(a, b, preferred_element_type=jnp.float32)


# ----------------------------- decoder params ------------------------------

class InitialDecoder:
    """decoder(txt): tanh(txt @ W + b) -> (B, H0, W0, C)."""

    def __init__(self, key, txt_dim, C, H, W):
        k1, k2 = jax.random.split(key)
        self.T, self.C, self.H, self.W = txt_dim, C, H, W
        self.w = 0.1 * jax.random.normal(k1, (txt_dim, H * W * C), F32)
        self.b = 0.1 * jax.random.normal(k2, (H * W * C,), F32)

    def fused_constants(self, B):
        """Constants so the layer becomes 3 small MXU dots + mask + tanh,
        producing the image directly in the packed (B*H, W*C) layout."""
        T, H, W, C = self.T, self.H, self.W, self.C
        w = np.asarray(self.w, np.float32)
        b = np.asarray(self.b, np.float32)
        # E0[b*H + y, b] = 1 : expands txt rows to packed-image rows via MXU.
        e0 = np.zeros((B * H, B), np.float32)
        for bb in range(B):
            e0[bb * H:(bb + 1) * H, bb] = 1.0
        # tile[t, y*T + t'] = delta(t, t') : tiles the txt row H times (lanes).
        tile = np.tile(np.eye(T, dtype=np.float32), (1, H))           # (T, H*T)
        # mask[b*H + y, y*T + t] = 1 : keeps only block y in packed row (b, y).
        mask = np.zeros((B * H, H * T), np.float32)
        for bb in range(B):
            for y in range(H):
                mask[bb * H + y, y * T:(y + 1) * T] = 1.0
        # w0r[y*T + t, x*C + c] = w[t, y*W*C + x*C + c]
        w0r = np.transpose(w.reshape(T, H, W * C), (1, 0, 2)).reshape(H * T, W * C)
        # b0r[b*H + y, x*C + c] = b[y*W*C + x*C + c]
        b0r = np.tile(b.reshape(H, W * C), (B, 1))
        # NOTE: W*C = 64 here (< 128 lanes) — acceptable for this size; pad to
        # 128 lanes if H0/W0/C grow while staying under a full vreg width.
        return (jnp.asarray(e0, BF16), jnp.asarray(tile, BF16),
                jnp.asarray(mask, F32), jnp.asarray(w0r, BF16),
                jnp.asarray(b0r, F32))


class UpsampleDecoder:
    """decoder(pre, txt): relu(conv3x3(upsample2x(pre)) + proj(txt) + b)."""

    def __init__(self, key, txt_dim, Cin, Cout):
        k1, k2, k3, k4 = jax.random.split(key, 4)
        self.T, self.Cin, self.Cout = txt_dim, Cin, Cout
        self.wc = 0.1 * jax.random.normal(k1, (3, 3, Cin, Cout), F32)
        self.bc = 0.1 * jax.random.normal(k2, (Cout,), F32)
        self.wt = 0.1 * jax.random.normal(k3, (txt_dim, Cout), F32)
        self.bt = 0.1 * jax.random.normal(k4, (txt_dim and Cout,), F32) \
            if False else 0.1 * jax.random.normal(k4, (Cout,), F32)

    def fused_constants(self, B, H_in, W_in):
        """Fold upsample-2x + zero 'SAME' pad + 3x3 conv + txt conditioning
        into two matmul factors per layer acting on the packed layout:
            acc = L_aug @ [x @ R_0; x @ R_1; x @ R_2; txt_proj]
        """
        Cin, Cout = self.Cin, self.Cout
        Hu, Wu = 2 * H_in, 2 * W_in
        cols = Wu * Cout
        rows_in = B * H_in
        wc = np.asarray(self.wc, np.float32)

        # R_cat = [R_0 | R_1 | R_2] along lanes;
        # R_dy[xin*Cin + ci, x*Cout + co] = sum of dx taps hitting input col xin.
        r_cat = np.zeros((W_in * Cin, 3 * cols), np.float32)
        for dy in range(3):
            for x in range(Wu):
                for dx in range(3):
                    v = x + dx - 1
                    if 0 <= v < Wu:
                        xin = v // 2
                        r_cat[xin * Cin:(xin + 1) * Cin,
                              dy * cols + x * Cout:dy * cols + (x + 1) * Cout] += wc[dy, dx]

        # L_aug = [L_0 | L_1 | L_2 | E_txt]
        # L_dy[b*Hu + y, b*H_in + (y+dy-1)//2] = 1 (when in range),
        # E_txt[b*Hu + y, b] = 1 (adds the per-batch txt+bias row).
        l_aug = np.zeros((B * Hu, 3 * rows_in + B), np.float32)
        for dy in range(3):
            for bb in range(B):
                for y in range(Hu):
                    u = y + dy - 1
                    if 0 <= u < Hu:
                        l_aug[bb * Hu + y, dy * rows_in + bb * H_in + u // 2] = 1.0
        for bb in range(B):
            l_aug[bb * Hu:(bb + 1) * Hu, 3 * rows_in + bb] = 1.0

        # Text conditioning (lane-tiled); conv bias folded into the txt bias.
        wtc = np.tile(np.asarray(self.wt, np.float32), (1, Wu))            # (T, cols)
        bsc = np.tile(np.asarray(self.bt + self.bc, np.float32), Wu)[None, :]
        return (jnp.asarray(r_cat, BF16), jnp.asarray(l_aug, BF16),
                wtc, bsc, (Hu, Wu, Cout))


# ------------------------------ fused decoder -------------------------------

class MultiscaleDecoder:
    """Pallas-backed equivalent of the PyTorch MultiscaleDecoder.forward.
    The whole decoder stack up to layer_id runs as ONE pallas_call."""

    def __init__(self, decoders):
        self.num_layer = len(decoders)
        self.decoders = decoders
        self._cache = {}

    def _build(self, B, layer_id):
        d0 = self.decoders[0]
        H0, W0, C0 = d0.H, d0.W, d0.C
        e0, tile, mask, w0r, b0r = d0.fused_constants(B)

        n_layers = layer_id
        H, W, C = H0, W0, C0
        r_cats, l_augs, wtcs, bscs, cols_list = [], [], [], [], []
        for i in range(1, layer_id + 1):
            d = self.decoders[i]
            assert d.Cin == C, "channel mismatch in decoder stack"
            r_cat, l_aug, wtc, bsc, (Hu, Wu, Cout) = d.fused_constants(B, H, W)
            r_cats.append(r_cat)
            l_augs.append(l_aug)
            wtcs.append(wtc)
            bscs.append(bsc)
            cols_list.append(Wu * Cout)
            H, W, C = Hu, Wu, Cout
        out_H, out_W, out_C = H, W, C
        n_manual = max(0, n_layers - 1)   # R_cats DMA'd manually (overlap)

        vmem_spec = pl.BlockSpec(memory_space=pltpu.MemorySpace.VMEM)
        any_spec = pl.BlockSpec(memory_space=pl.ANY)

        inputs, in_specs = [None], [vmem_spec]          # slot 0 = txt (runtime)
        for a in (e0, tile, mask, w0r, b0r):
            inputs.append(a); in_specs.append(vmem_spec)
        if n_layers:
            wtc_all = jnp.asarray(np.concatenate(wtcs, axis=1), BF16)
            bsc_all = jnp.asarray(np.concatenate(bscs, axis=1), F32)
            inputs.append(wtc_all); in_specs.append(vmem_spec)
            inputs.append(bsc_all); in_specs.append(vmem_spec)
        for li in range(n_layers):
            inputs.append(r_cats[li])
            in_specs.append(any_spec if li >= 1 else vmem_spec)
            inputs.append(l_augs[li]); in_specs.append(vmem_spec)
        n_in = len(inputs)

        scratch_shapes = [pltpu.VMEM(r_cats[li].shape, BF16)
                          for li in range(1, n_layers)]
        if n_manual:
            scratch_shapes.append(pltpu.SemaphoreType.DMA((n_manual,)))

        def kernel(*refs):
            in_refs = refs[:n_in]
            o_ref = refs[n_in]
            scratch = refs[n_in + 1:]
            txt_ref = in_refs[0]
            e0_r, tile_r, mask_r, w0r_r, b0r_r = in_refs[1:6]
            idx = 6
            if n_layers:
                wtc_r, bsc_r = in_refs[6:8]
                idx = 8
            layer_r = [(in_refs[idx + 2 * li], in_refs[idx + 2 * li + 1])
                       for li in range(n_layers)]
            r_bufs = scratch[:n_manual]
            sem = scratch[n_manual] if n_manual else None

            # Kick off HBM->VMEM DMAs for late-layer conv factors first so the
            # transfer hides behind the initial + earlier-layer compute.
            copies = []
            for j in range(n_manual):
                cp = pltpu.make_async_copy(layer_r[j + 1][0], r_bufs[j], sem.at[j])
                cp.start()
                copies.append(cp)

            txt_bf = txt_ref[...].astype(BF16)

            # txt conditioning for ALL upsample layers in one dot (+ fused bias).
            if n_layers:
                t_all = _dot(txt_bf, wtc_r[...]) + bsc_r[...]        # (B, sum cols)

            # InitialDecoder: tanh(txt @ W0 + b0) in packed (B*H0, W0*C0) layout.
            txt_exp = _dot(e0_r[...], txt_bf)                        # (B*H0, T) exact
            a = _dot(txt_exp.astype(BF16), tile_r[...]) * mask_r[...]
            x = jnp.tanh(_dot(a.astype(BF16), w0r_r[...]) + b0r_r[...])

            # UpsampleDecoders: relu(L_aug @ [x@R_0; x@R_1; x@R_2; txt_proj]).
            t_off = 0
            for li in range(n_layers):
                cols = cols_list[li]
                if li == 0:
                    r = layer_r[0][0][...]
                else:
                    copies[li - 1].wait()
                    r = r_bufs[li - 1][...]
                y = _dot(x.astype(BF16), r)                          # (B*H_in, 3*cols)
                y_aug = jnp.concatenate(
                    [y[:, 0:cols], y[:, cols:2 * cols], y[:, 2 * cols:3 * cols],
                     t_all[:, t_off:t_off + cols]], axis=0)
                acc = _dot(layer_r[li][1][...], y_aug.astype(BF16))  # (B*Hu, cols)
                x = jnp.maximum(acc, 0.0)
                t_off += cols

            # Lane-dense store (last dim = out_W*out_C, multiple of 128 here).
            o_ref[...] = x

        fn = pl.pallas_call(
            kernel,
            out_shape=jax.ShapeDtypeStruct((B * out_H, out_W * out_C), F32),
            in_specs=in_specs,
            out_specs=pl.BlockSpec(memory_space=pltpu.MemorySpace.VMEM),
            scratch_shapes=scratch_shapes,
            compiler_params=pltpu.CompilerParams(
                vmem_limit_bytes=16 * 1024 * 1024),
        )
        return fn, inputs[1:], (out_H, out_W, out_C)

    def __call__(self, txt_embed, layer_id):
        B = txt_embed.shape[0]
        key = (B, layer_id)
        if key not in self._cache:
            self._cache[key] = self._build(B, layer_id)
        fn, consts, (Ho, Wo, Co) = self._cache[key]
        out = fn(txt_embed, *consts)
        # Contiguous metadata-only reshape back to NHWC for the caller.
        return out.reshape(B, Ho, Wo, Co)


# --------------------------- pure-JAX reference -----------------------------

def ref_forward(model, txt, layer_id):
    hi = jax.lax.Precision.HIGHEST
    pre = None
    for i in range(layer_id + 1):
        d = model.decoders[i]
        if i == 0:
            h = jnp.tanh(jnp.dot(txt, d.w, precision=hi) + d.b)
            pre = h.reshape(txt.shape[0], d.H, d.W, d.C)
        else:
            up = jnp.repeat(jnp.repeat(pre, 2, axis=1), 2, axis=2)
            t = jnp.dot(txt, d.wt, precision=hi) + d.bt
            conv = jax.lax.conv_general_dilated(
                up, d.wc, (1, 1), "SAME",
                dimension_numbers=("NHWC", "HWIO", "NHWC"), precision=hi)
            pre = jnp.maximum(conv + t[:, None, None, :] + d.bc, 0.0)
    return pre


# --------------------------------- main -------------------------------------

if __name__ == "__main__":
    key = jax.random.PRNGKey(0)
    ktxt, k0, k1, k2 = jax.random.split(key, 4)

    B, T, C = 2, 32, 8          # batch, text-embedding dim, image channels
    txt_embed = jax.random.normal(ktxt, (B, T), F32)

    decoders = [
        InitialDecoder(k0, T, C, 8, 8),     # (B,  8,  8, C)
        UpsampleDecoder(k1, T, C, C),       # (B, 16, 16, C)
        UpsampleDecoder(k2, T, C, C),       # (B, 32, 32, C)
    ]
    model = MultiscaleDecoder(decoders)

    layer_id = 2
    out = jax.block_until_ready(model(txt_embed, layer_id))
    assert out.shape == (B, 32, 32, C)

    ref = ref_forward(model, txt_embed, layer_id)
    # bf16 MXU operands (deliberate, per perf review) vs f32 HIGHEST reference.
    np.testing.assert_allclose(np.asarray(out), np.asarray(ref),
                               atol=2e-2, rtol=2e-2)
    print("KERNEL_OK")
</pallas_src>

<mosaic_0001>
module attributes {stable_mosaic.version = 11 : i64} {
  func.func @kernel(%arg0: memref<2x32xf32, #tpu.memory_space<vmem>>, %arg1: memref<16x2xbf16, #tpu.memory_space<vmem>>, %arg2: memref<32x256xbf16, #tpu.memory_space<vmem>>, %arg3: memref<16x256xf32, #tpu.memory_space<vmem>>, %arg4: memref<256x64xbf16, #tpu.memory_space<vmem>>, %arg5: memref<16x64xf32, #tpu.memory_space<vmem>>, %arg6: memref<32x384xbf16, #tpu.memory_space<vmem>>, %arg7: memref<1x384xf32, #tpu.memory_space<vmem>>, %arg8: memref<64x384xbf16, #tpu.memory_space<vmem>>, %arg9: memref<32x50xbf16, #tpu.memory_space<vmem>>, %arg10: memref<128x768xbf16, #tpu.memory_space<any>>, %arg11: memref<64x98xbf16, #tpu.memory_space<vmem>>, %arg12: memref<64x256xf32, #tpu.memory_space<vmem>>, %arg13: memref<128x768xbf16, #tpu.memory_space<vmem>>, %arg14: memref<1x!tpu.dma_semaphore, #tpu.memory_space<semaphore_mem>>) attributes {dimension_semantics = [], scalar_prefetch = 0 : i64, scratch_operands = 2 : i64, tpu.core_type = #tpu.core_type<tc>} {
    %c0_i32 = arith.constant 0 : i32
    %0 = tpu.memref_slice %arg14[%c0_i32] : memref<1x!tpu.dma_semaphore, #tpu.memory_space<semaphore_mem>> -> memref<1x!tpu.dma_semaphore, #tpu.memory_space<semaphore_mem>>
    %1 = tpu.memref_squeeze %0 : memref<1x!tpu.dma_semaphore, #tpu.memory_space<semaphore_mem>> -> memref<!tpu.dma_semaphore, #tpu.memory_space<semaphore_mem>>
    tpu.enqueue_dma source(%arg10 : memref<128x768xbf16, #tpu.memory_space<any>>) target(%arg13 : memref<128x768xbf16, #tpu.memory_space<vmem>>) target_semaphore(%1 : memref<!tpu.dma_semaphore, #tpu.memory_space<semaphore_mem>>)
    %c0 = arith.constant 0 : index
    %c0_0 = arith.constant 0 : index
    %2 = vector.load %arg0[%c0, %c0_0] : memref<2x32xf32, #tpu.memory_space<vmem>>, vector<2x32xf32>
    %3 = arith.truncf %2 : vector<2x32xf32> to vector<2x32xbf16>
    %c0_1 = arith.constant 0 : index
    %c0_2 = arith.constant 0 : index
    %4 = vector.load %arg6[%c0_1, %c0_2] : memref<32x384xbf16, #tpu.memory_space<vmem>>, vector<32x384xbf16>
    %cst = arith.constant dense<0.000000e+00> : vector<2x384xf32>
    %5 = tpu.matmul %3, %4, %cst {dimension_numbers = #tpu.dot_dimension_numbers<[1], [0], [0], [1], [0, 0, 1, 1], [], []>} : vector<2x32xbf16>, vector<32x384xbf16>, vector<2x384xf32> -> vector<2x384xf32>
    %c0_3 = arith.constant 0 : index
    %c0_4 = arith.constant 0 : index
    %6 = vector.load %arg7[%c0_3, %c0_4] : memref<1x384xf32, #tpu.memory_space<vmem>>, vector<1x384xf32>
    %7 = vector.broadcast %6 : vector<1x384xf32> to vector<2x384xf32>
    %8 = arith.addf %5, %7 : vector<2x384xf32>
    %c0_5 = arith.constant 0 : index
    %c0_6 = arith.constant 0 : index
    %9 = vector.load %arg1[%c0_5, %c0_6] : memref<16x2xbf16, #tpu.memory_space<vmem>>, vector<16x2xbf16>
    %cst_7 = arith.constant dense<0.000000e+00> : vector<16x32xf32>
    %10 = tpu.matmul %9, %3, %cst_7 {dimension_numbers = #tpu.dot_dimension_numbers<[1], [0], [0], [1], [0, 0, 1, 1], [], []>} : vector<16x2xbf16>, vector<2x32xbf16>, vector<16x32xf32> -> vector<16x32xf32>
    %11 = arith.truncf %10 : vector<16x32xf32> to vector<16x32xbf16>
    %c0_8 = arith.constant 0 : index
    %c0_9 = arith.constant 0 : index
    %12 = vector.load %arg2[%c0_8, %c0_9] : memref<32x256xbf16, #tpu.memory_space<vmem>>, vector<32x256xbf16>
    %cst_10 = arith.constant dense<0.000000e+00> : vector<16x256xf32>
    %13 = tpu.matmul %11, %12, %cst_10 {dimension_numbers = #tpu.dot_dimension_numbers<[1], [0], [0], [1], [0, 0, 1, 1], [], []>} : vector<16x32xbf16>, vector<32x256xbf16>, vector<16x256xf32> -> vector<16x256xf32>
    %c0_11 = arith.constant 0 : index
    %c0_12 = arith.constant 0 : index
    %14 = vector.load %arg3[%c0_11, %c0_12] : memref<16x256xf32, #tpu.memory_space<vmem>>, vector<16x256xf32>
    %15 = arith.mulf %13, %14 : vector<16x256xf32>
    %16 = arith.truncf %15 : vector<16x256xf32> to vector<16x256xbf16>
    %c0_13 = arith.constant 0 : index
    %c0_14 = arith.constant 0 : index
    %17 = vector.load %arg4[%c0_13, %c0_14] : memref<256x64xbf16, #tpu.memory_space<vmem>>, vector<256x64xbf16>
    %cst_15 = arith.constant dense<0.000000e+00> : vector<16x64xf32>
    %18 = tpu.matmul %16, %17, %cst_15 {dimension_numbers = #tpu.dot_dimension_numbers<[1], [0], [0], [1], [0, 0, 1, 1], [], []>} : vector<16x256xbf16>, vector<256x64xbf16>, vector<16x64xf32> -> vector<16x64xf32>
    %c0_16 = arith.constant 0 : index
    %c0_17 = arith.constant 0 : index
    %19 = vector.load %arg5[%c0_16, %c0_17] : memref<16x64xf32, #tpu.memory_space<vmem>>, vector<16x64xf32>
    %20 = arith.addf %18, %19 : vector<16x64xf32>
    %21 = math.tanh %20 : vector<16x64xf32>
    %c0_18 = arith.constant 0 : index
    %c0_19 = arith.constant 0 : index
    %22 = vector.load %arg8[%c0_18, %c0_19] : memref<64x384xbf16, #tpu.memory_space<vmem>>, vector<64x384xbf16>
    %23 = arith.truncf %21 : vector<16x64xf32> to vector<16x64xbf16>
    %cst_20 = arith.constant dense<0.000000e+00> : vector<16x384xf32>
    %24 = tpu.matmul %23, %22, %cst_20 {dimension_numbers = #tpu.dot_dimension_numbers<[1], [0], [0], [1], [0, 0, 1, 1], [], []>} : vector<16x64xbf16>, vector<64x384xbf16>, vector<16x384xf32> -> vector<16x384xf32>
    %25 = vector.extract_strided_slice %24 {offsets = [0, 0], sizes = [16, 128], strides = [1, 1]} : vector<16x384xf32> to vector<16x128xf32>
    %26 = vector.extract_strided_slice %24 {offsets = [0, 128], sizes = [16, 128], strides = [1, 1]} : vector<16x384xf32> to vector<16x128xf32>
    %27 = vector.extract_strided_slice %24 {offsets = [0, 256], sizes = [16, 128], strides = [1, 1]} : vector<16x384xf32> to vector<16x128xf32>
    %28 = vector.extract_strided_slice %8 {offsets = [0, 0], sizes = [2, 128], strides = [1, 1]} : vector<2x384xf32> to vector<2x128xf32>
    %29 = tpu.concatenate %25, %26, %27, %28 in 0 : vector<16x128xf32>, vector<16x128xf32>, vector<16x128xf32>, vector<2x128xf32> -> vector<50x128xf32>
    %c0_21 = arith.constant 0 : index
    %c0_22 = arith.constant 0 : index
    %30 = vector.load %arg9[%c0_21, %c0_22] : memref<32x50xbf16, #tpu.memory_space<vmem>>, vector<32x50xbf16>
    %31 = arith.truncf %29 : vector<50x128xf32> to vector<50x128xbf16>
    %cst_23 = arith.constant dense<0.000000e+00> : vector<32x128xf32>
    %32 = tpu.matmul %30, %31, %cst_23 {dimension_numbers = #tpu.dot_dimension_numbers<[1], [0], [0], [1], [0, 0, 1, 1], [], []>} : vector<32x50xbf16>, vector<50x128xbf16>, vector<32x128xf32> -> vector<32x128xf32>
    %cst_24 = arith.constant 0.000000e+00 : f32
    %33 = vector.broadcast %cst_24 : f32 to vector<32x128xf32>
    %34 = arith.maximumf %32, %33 : vector<32x128xf32>
    %c0_i32_25 = arith.constant 0 : i32
    %35 = tpu.memref_slice %arg14[%c0_i32_25] : memref<1x!tpu.dma_semaphore, #tpu.memory_space<semaphore_mem>> -> memref<1x!tpu.dma_semaphore, #tpu.memory_space<semaphore_mem>>
    %36 = tpu.memref_squeeze %35 : memref<1x!tpu.dma_semaphore, #tpu.memory_space<semaphore_mem>> -> memref<!tpu.dma_semaphore, #tpu.memory_space<semaphore_mem>>
    tpu.wait_dma2 semaphore(%36 : memref<!tpu.dma_semaphore, #tpu.memory_space<semaphore_mem>>) src(%arg10 : memref<128x768xbf16, #tpu.memory_space<any>>) dst(%arg13 : memref<128x768xbf16, #tpu.memory_space<vmem>>)
    %c0_26 = arith.constant 0 : index
    %c0_27 = arith.constant 0 : index
    %37 = vector.load %arg13[%c0_26, %c0_27] : memref<128x768xbf16, #tpu.memory_space<vmem>>, vector<128x768xbf16>
    %38 = arith.truncf %34 : vector<32x128xf32> to vector<32x128xbf16>
    %cst_28 = arith.constant dense<0.000000e+00> : vector<32x768xf32>
    %39 = tpu.matmul %38, %37, %cst_28 {dimension_numbers = #tpu.dot_dimension_numbers<[1], [0], [0], [1], [0, 0, 1, 1], [], []>} : vector<32x128xbf16>, vector<128x768xbf16>, vector<32x768xf32> -> vector<32x768xf32>
    %40 = vector.extract_strided_slice %39 {offsets = [0, 0], sizes = [32, 256], strides = [1, 1]} : vector<32x768xf32> to vector<32x256xf32>
    %41 = vector.extract_strided_slice %39 {offsets = [0, 256], sizes = [32, 256], strides = [1, 1]} : vector<32x768xf32> to vector<32x256xf32>
    %42 = vector.extract_strided_slice %39 {offsets = [0, 512], sizes = [32, 256], strides = [1, 1]} : vector<32x768xf32> to vector<32x256xf32>
    %43 = vector.extract_strided_slice %8 {offsets = [0, 128], sizes = [2, 256], strides = [1, 1]} : vector<2x384xf32> to vector<2x256xf32>
    %44 = tpu.concatenate %40, %41, %42, %43 in 0 : vector<32x256xf32>, vector<32x256xf32>, vector<32x256xf32>, vector<2x256xf32> -> vector<98x256xf32>
    %c0_29 = arith.constant 0 : index
    %c0_30 = arith.constant 0 : index
    %45 = vector.load %arg11[%c0_29, %c0_30] : memref<64x98xbf16, #tpu.memory_space<vmem>>, vector<64x98xbf16>
    %46 = arith.truncf %44 : vector<98x256xf32> to vector<98x256xbf16>
    %cst_31 = arith.constant dense<0.000000e+00> : vector<64x256xf32>
    %47 = tpu.matmul %45, %46, %cst_31 {dimension_numbers = #tpu.dot_dimension_numbers<[1], [0], [0], [1], [0, 0, 1, 1], [], []>} : vector<64x98xbf16>, vector<98x256xbf16>, vector<64x256xf32> -> vector<64x256xf32>
    %cst_32 = arith.constant 0.000000e+00 : f32
    %48 = vector.broadcast %cst_32 : f32 to vector<64x256xf32>
    %49 = arith.maximumf %47, %48 : vector<64x256xf32>
    %c0_33 = arith.constant 0 : index
    %c0_34 = arith.constant 0 : index
    %50 = vector.load %arg12[%c0_33, %c0_34] : memref<64x256xf32, #tpu.memory_space<vmem>>, vector<64x256xf32>
    tpu.vector_store %arg12[%c0_33, %c0_34], %49 {strides = array<i32>} : memref<64x256xf32, #tpu.memory_space<vmem>>, vector<64x256xf32>,
    return
  }
}

</mosaic_0001>

<bundles_post_ra>
// kernel: tpu_custom_call.1
= control target key start
LH: loop header
LB: loop body
LE: loop exit
PB: predicated region body
PF: predicated region fallthrough
CT: control target
= control target key end

     0   :  { %17 = vsyncpa [#allocation5], 0  ;;  %s1946_s0 = inlined_call_operand.hbm [shape: f32[2,32], index: 0, kind: input, shape index: {}]   ;;  %s1947_s1 = inlined_call_operand.vmem [shape: bf16[16,2], index: 1, kind: input, shape index: {}]   ;;  %s1948_s2 = inlined_call_operand.vmem [shape: bf16[32,256], index: 2, kind: input, shape index: {}]   ;;  %s1949_s3 = inlined_call_operand.vmem [shape: f32[16,256], index: 3, kind: input, shape index: {}]   ;;  %s1950_s4 = inlined_call_operand.vmem [shape: bf16[256,64], index: 4, kind: input, shape index: {}]   ;;  %s1951_s5 = inlined_call_operand.hbm [shape: f32[16,64], index: 5, kind: input, shape index: {}]   ;;  %s1952_s6 = inlined_call_operand.vmem [shape: bf16[32,384], index: 6, kind: input, shape index: {}]   ;;  %s1953_s7 = inlined_call_operand.hbm [shape: f32[1,384], index: 7, kind: input, shape index: {}]   ;;  %s1954_s8 = inlined_call_operand.vmem [shape: bf16[64,384], index: 8, kind: input, shape index: {}]   ;;  %s1955_s9 = inlined_call_operand.hbm [shape: bf16[32,50], index: 9, kind: input, shape index: {}]   ;;  %s1956_s10 = inlined_call_operand.hbm [shape: bf16[128,768], index: 10, kind: input, shape index: {}]   ;;  %s1957_s11 = inlined_call_operand.vmem [shape: bf16[64,98], index: 11, kind: input, shape index: {}]   ;;  %s1958_s12 = inlined_call_operand.hbm [shape: f32[64,256], index: 12, kind: output, shape index: {}]  }
   0x1   :  { %18 = vsyncpa [#allocation8], 0 }
   0x2   :  { %19 = vsyncpa [#allocation11], 0 }
   0x3   :  { %20 = vsyncpa [#allocation6], 0  ;;  %s1570_s21 = smov [#allocation7]   ;;  %s1450_s25 = scalar_lea.hbm %s1951_s5, 256 }
   0x4   :  { %s44_s22 = sshll.u32 %s1570_s21, 4  ;;  %p1451_p0 = scmp.ne.s32.totalorder %s1951_s5, %s1450_s25  ;;  %s45_s22 = int_to_ptr.vmem [resolvable:$true] %s44_s22 }
   0x5   :  { %p1454_p1 = scmp.lt.u32.totalorder %s1450_s25, %s1951_s5 }
   0x7   :  { %p1456_p2 = pnand %p1454_p1, %p1451_p0 }
   0x9   :  { %1459 = shalt.err (!%p1456_p2)
}
   0xa   :  { %s1460_s30 = scalar_lea.vmem %s45_s22, 256  ;;  %p1465_p4 = scmp.lt.s32.totalorder %s45_s22, %s45_s22 }
   0xb   :  { %p1461_p3 = scmp.ne.s32.totalorder %s45_s22, %s1460_s30  ;;  %p1466_p5 = scmp.lt.s32.totalorder %s1460_s30, %s1460_s30 }
   0xd   :  { %p1467_p6 = por %p1466_p5, %p1465_p4 }
   0xf   :  { %p1468_p7 = pnand %p1467_p6, %p1461_p3 }
  0x11   :  { %1471 = shalt.err (!%p1468_p7)
}
  0x12   :  { %s1571_s13 = smov 128   ;;  %s1572_s14 = smov 8  }
  0x13   :  { %50 = dma.hbm_to_vmem [thread:$0]  %s1951_s5, 256, %s45_s22, [#allocation8], %s1571_s13, %s1571_s13, %s1572_s14  }
  0x14   :  { %s1573_s17 = smov [#allocation4]   ;;  %s1574_s19 = smov [#allocation9]  }
  0x15   :  { %s27_s18 = sshll.u32 %s1573_s17, 4  ;;  %s59_s20 = sshll.u32 %s1574_s19, 4  ;;  %s28_s18 = int_to_ptr.vmem [resolvable:$true] %s27_s18  ;;  %s60_s20 = int_to_ptr.vmem [resolvable:$true] %s59_s20 }
  0x16   :  { %s1472_s24 = scalar_lea.hbm %s1946_s0, 32 }
  0x17   :  { %p1473_p8 = scmp.ne.s32.totalorder %s1946_s0, %s1472_s24  ;;  %p1476_p9 = scmp.lt.u32.totalorder %s1472_s24, %s1946_s0 }
  0x19   :  { %p1478_p10 = pnand %p1476_p9, %p1473_p8 }
  0x1b   :  { %1481 = shalt.err (!%p1478_p10)
}
  0x1c   :  { %s1482_s5 = scalar_lea.vmem %s28_s18, 32  ;;  %p1487_p12 = scmp.lt.s32.totalorder %s28_s18, %s28_s18 }
  0x1d   :  { %p1483_p11 = scmp.ne.s32.totalorder %s28_s18, %s1482_s5  ;;  %p1488_p13 = scmp.lt.s32.totalorder %s1482_s5, %s1482_s5 }
  0x1f   :  { %p1489_p0 = por %p1488_p13, %p1487_p12 }
  0x21   :  { %p1490_p1 = pnand %p1489_p0, %p1483_p11 }
  0x23   :  { %1493 = shalt.err (!%p1490_p1)
}
  0x24   :  { %30 = dma.hbm_to_vmem [thread:$0]  %s1946_s0, 32, %s28_s18, [#allocation5]  }
  0x25   :  { %s1494_s15 = scalar_lea.hbm %s1953_s7, 48 }
  0x26   :  { %p1495_p2 = scmp.ne.s32.totalorder %s1953_s7, %s1494_s15  ;;  %p1498_p3 = scmp.lt.u32.totalorder %s1494_s15, %s1953_s7 }
  0x28   :  { %p1500_p4 = pnand %p1498_p3, %p1495_p2 }
  0x2a   :  { %1503 = shalt.err (!%p1500_p4)
}
  0x2b   :  { %s1504_s23 = scalar_lea.vmem %s60_s20, 48  ;;  %s1508_s24 = scalar_lea.vmem %s60_s20, 64 }
  0x2c   :  { %p1505_p5 = scmp.ne.s32.totalorder %s60_s20, %s1504_s23  ;;  %p1509_p6 = scmp.lt.s32.totalorder %s60_s20, %s60_s20 }
  0x2d   :  { %p1510_p7 = scmp.lt.s32.totalorder %s1508_s24, %s1504_s23 }
  0x2f   :  { %p1511_p8 = por %p1510_p7, %p1509_p6 }
  0x31   :  { %p1512_p9 = pnand %p1511_p8, %p1505_p5 }
  0x33   :  { %1515 = shalt.err (!%p1512_p9)
}
  0x34   :  { %62 = dma.hbm_to_vmem [thread:$0]  %s1953_s7, 48, %s60_s20, [#allocation8]  }
  0x35   :  { %s1575_s25 = smov [#allocation10]   ;;  %s1516_s5 = scalar_lea.hbm %s1955_s9, 256 }
  0x36   :  { %s70_s26 = sshll.u32 %s1575_s25, 4  ;;  %p1517_p10 = scmp.ne.s32.totalorder %s1955_s9, %s1516_s5  ;;  %s71_s26 = int_to_ptr.vmem [resolvable:$true] %s70_s26 }
  0x37   :  { %p1520_p11 = scmp.lt.u32.totalorder %s1516_s5, %s1955_s9 }
  0x39   :  { %p1522_p12 = pnand %p1520_p11, %p1517_p10 }
  0x3b   :  { %1525 = shalt.err (!%p1522_p12)
}
  0x3c   :  { %s1526_s15 = scalar_lea.vmem %s71_s26, 256  ;;  %p1531_p0 = scmp.lt.s32.totalorder %s71_s26, %s71_s26 }
  0x3d   :  { %p1527_p13 = scmp.ne.s32.totalorder %s71_s26, %s1526_s15  ;;  %p1532_p1 = scmp.lt.s32.totalorder %s1526_s15, %s1526_s15 }
  0x3f   :  { %p1533_p2 = por %p1532_p1, %p1531_p0 }
  0x41   :  { %p1534_p3 = pnand %p1533_p2, %p1527_p13 }
  0x43   :  { %1537 = shalt.err (!%p1534_p3)
}
  0x44   :  { %s1576_s7 = smov 64   ;;  %s1577_s20 = smov 4  }
  0x45   :  { %76 = dma.hbm_to_vmem [thread:$0]  %s1955_s9, 256, %s71_s26, [#allocation11], %s1576_s7, %s1576_s7, %s1577_s20  }
  0x46   :  { %1560 = dma.done.wait [#allocation5], 32  }
  0x47   :  { %1561 = vsyncadd [#allocation5], 4294967264 }
  0x48   :  { %1562 = dma.done.wait [#allocation8], 304  }
  0x49   :  { %1563 = vsyncadd [#allocation8], 4294966992 }
  0x4a   :  { %1564 = dma.done.wait [#allocation11], 256  }
  0x4b   :  { %1565 = vsyncadd [#allocation11], 4294967040  ;;  %s96_s19 = sld [smem:[#allocation0]]   ;;  %s1578_s21 = smov 768   ;;  %v1579_v0 = vmov 0.0   ;;  %vm1580_vm0 = vmmov 0   ;;  %v139_v18 = vlaneseq }
  0x4c   :  { %108 = sst [smem:[#allocation14]] %s1578_s21  ;;  %1341 = vmatprep.subr.bf16.mxu0 %v1579_v0  ;;  %1343 = vmatprep.mubr.msk.bf16.mxu0 %vm1580_vm0, %v1579_v0  ;;  %v1581_v1 = vmov 0   ;;  %s1582_s9 = smov 6   ;;  %vm282_vm1 = vcmask 1040384   ;;  %vm278_vm2 = vcmask 15360   ;;  %vm186_vm3 = vcmask 261120  }
  0x4d   :  { %110 = sst [smem:[#allocation14 + $0x1]] %s1578_s21  ;;  %222 = vmatprep.mubr.bf16.mxu1 %v1581_v1  ;;  %s1583_s23 = smov [#allocation2]   ;;  %v1767_v19 = vshrl.u32 %v139_v18, 7  ;;  %vm661_vm4 = vcmask 523264   ;;  %vm767_vm5 = vcmask 408576  }
  0x4e   :  { %112 = sst [smem:[#allocation14 + $0x2]] %s1582_s9  ;;  %s104_s24 = sshll.u32 %s1583_s23, 4  ;;  %s105_s24 = int_to_ptr.vmem [resolvable:$true] %s104_s24 }
  0x4f   :  { %114 = sst [smem:[#allocation14 + $0x3]] %s1576_s7  ;;  %s1584_s0 = smov 2   ;;  %v145_v22 = vsub.s32 1, %v1767_v19  ;;  %v149_v25 = vsub.s32 2, %v1767_v19 }
  0x50   :  { %116 = sst [smem:[#allocation14 + $0x4]] %s1571_s13  ;;  %s1585_s25 = smov 384  }
  0x51   :  { %118 = sst [smem:[#allocation14 + $0x5]] %s1584_s0  ;;  %s1234_s18 = sshll.u32 %s96_s19, 26 }
  0x52   :  { %120 = sst [smem:[#allocation14 + $0x6]] %s1585_s25  ;;  %s1235_s26 = sadd.s32 134217728, %s1234_s18 }
  0x53   :  { %122 = sst [smem:[#allocation14 + $0x7]] %s1576_s7  ;;  %s1586_s27 = smov [#allocation3]  }
  0x54   :  { %124 = sst [smem:[#allocation14 + $0x8]] %s1577_s20  ;;  %s1587_s28 = smov [#allocation13]  }
  0x55   :  { %126 = dma.general %s1956_s10, 6144, %s105_s24, %s1586_s27, %s1587_s28, [#allocation14], %s1235_s26, 0  }
  0x56   :  { %v127_v2 = vld [vmem:[#allocation4] sm:$0x3]  ;;  %v1394_v4 = vld [vmem:[%s1952_s6 + $0x4] ss:$12 sps:$4 sm:$0xff]   ;;  %v1397_v8 = vld [vmem:[%s1952_s6 + $0x1c] ss:$12 sps:$4 sm:$0xff]  }
  0x57   :  { %v128_v3 = vpack.c.bf16 %v127_v2, %v127_v2  ;;  %v1396_v5 = vld [vmem:[%s1952_s6] ss:$12 sps:$4 sm:$0xff]   ;;  %190 = vmatprep.subr.bf16.mxu1 %v1394_v4  ;;  %v1399_v9 = vld [vmem:[%s1952_s6 + $0x18] ss:$12 sps:$4 sm:$0xff]   ;;  %v1400_v10 = vld [vmem:[%s1952_s6 + $0x8] ss:$12 sps:$4 sm:$0xff]  }
  0x58   :  { %v1393_v7 = vld [vmem:[%s1947_s1] sm:$0xff]   ;;  %191 = vmatpush1.bf16.msra.mxu1 %v1396_v5  ;;  %v1407_v14 = vld [vmem:[%s1948_s2 + $0x14] ss:$8 sps:$4 sm:$0xff]   ;;  %v1405_v15 = vld [vmem:[%s1948_s2 + $0x10] ss:$8 sps:$4 sm:$0xff]  }
  0x59   :  { %v283_v6 = vsel %vm282_vm1, %v128_v3, 0  ;;  %192 = vmatprep.subr.bf16.mxu1 %v1397_v8  ;;  %v1401_v11 = vld [vmem:[%s1952_s6 + $0x20] ss:$12 sps:$4 sm:$0xff]   ;;  %v1769_v20 = vld [vmem:[#allocation9] sm:$0x7]  ;;  %v1414_v29 = vld [vmem:[%s1950_s4 + $0x58] sm:$0xff]  }
  0x5a   :  { %1342 = vmatpush3.bf16.msra.mxu0 %v283_v6  ;;  %v1404_v12 = vld [vmem:[%s1948_s2 + $0x4] ss:$8 sps:$4 sm:$0xff]   ;;  %v1402_v13 = vld [vmem:[%s1948_s2] ss:$8 sps:$4 sm:$0xff]   ;;  %v1412_v24 = vld [vmem:[%s1950_s4 + $0x50] sm:$0xff]   ;;  %v146_v26 = vrot.slane %v1769_v20, %v145_v22  ;;  %v150_v27 = vrot.slane %v1769_v20, %v149_v25 }
  0x5b   :  { %v1408_v16 = vld [vmem:[%s1950_s4 + $0x40] sm:$0xff]   ;;  %v1410_v21 = vld [vmem:[%s1950_s4 + $0x48] sm:$0xff]   ;;  %v1413_v28 = vld [vmem:[%s1950_s4 + $0x10] sm:$0xff]  }
  0x5c   :  { %193 = vmatpush1.bf16.msra.mxu1 %v1399_v9  ;;  %v1409_v17 = vld [vmem:[%s1950_s4] sm:$0xff]   ;;  %1300 = vmatprep.subr.bf16.mxu0 %v1408_v16  ;;  %v1411_v23 = vld [vmem:[%s1950_s4 + $0x8] sm:$0xff]   ;;  %v1415_v30 = vld [vmem:[%s1950_s4 + $0x18] sm:$0xff]  }
  0x5d   :  { %1344 = vmatmul.mubr.msk.bf16.vlgmr.msra.gmra.mrb[0].mxu0 %vm278_vm2, %v1393_v7  ;;  %1333 = vmatprep.subr.bf16.mxu1 %v1579_v0  ;;  %v1416_v31 = vld [vmem:[%s1950_s4 + $0x60] sm:$0xff]   ;;  %v1418_v33 = vld [vmem:[%s1950_s4 + $0x68] sm:$0xff]   ;;  %v1420_v50 = vld [vmem:[%s1950_s4 + $0x70] sm:$0xff]  }
  0x5e   :  { %1301 = vmatpush3.bf16.msra.mxu0 %v1409_v17  ;;  %v1417_v32 = vld [vmem:[%s1950_s4 + $0x20] sm:$0xff]   ;;  %v1419_v34 = vld [vmem:[%s1950_s4 + $0x28] sm:$0xff]   ;;  %v1421_v51 = vld [vmem:[%s1950_s4 + $0x30] sm:$0xff]  }
  0x5f   :  { %1242 = vmatmul.mubr.msk.bf16.vlgmr.msra.gmra.mrb[0].mxu1 %vm186_vm3, %v128_v3  ;;  %1302 = vmatprep.subr.bf16.mxu0 %v1410_v21  ;;  %v1422_v52 = vld [vmem:[%s1950_s4 + $0x78] sm:$0xff]   ;;  %v397_v55 = vld [vmem:[%s1949_s3] sm:$0xff]  ;;  %v399_v56 = vld [vmem:[%s1949_s3 + $0x10] sm:$0xff] }
  0x60   :  { %1334 = vmatpush3.bf16.msra.mxu1 %v1400_v10  ;;  %1337 = vmatprep.mubr.msk.bf16.mxu1 %vm1580_vm0, %v1579_v0  ;;  %v1423_v53 = vld [vmem:[%s1950_s4 + $0x38] sm:$0xff]   ;;  %v398_v58 = vld [vmem:[%s1949_s3 + $0x8] sm:$0xff]  ;;  %v1426_v6 = vld [vmem:[%s1954_s8 + $0x4] ss:$12 sps:$4 sm:$0xff]  }
  0x61   :  { %1335 = vmatprep.subr.bf16.mxu1 %v1579_v0  ;;  %v400_v59 = vld [vmem:[%s1949_s3 + $0x18] sm:$0xff]  ;;  %v1424_v7 = vld [vmem:[%s1954_s8] ss:$12 sps:$4 sm:$0xff]  }
  0x62   :  { %1303 = vmatpush3.bf16.msra.mxu0 %v1411_v23  ;;  %v1429_v8 = vld [vmem:[%s1954_s8 + $0x1c] ss:$12 sps:$4 sm:$0xff]   ;;  %v1427_v9 = vld [vmem:[%s1954_s8 + $0x18] ss:$12 sps:$4 sm:$0xff]   ;;  %v1432_v10 = vld [vmem:[%s1954_s8 + $0x34] ss:$12 sps:$4 sm:$0xff]  }
  0x63   :  { %1304 = vmatprep.subr.bf16.mxu0 %v1412_v24  ;;  %v440_v21 = vld [vmem:[#allocation7 + $0x8] sm:$0xff] }
  0x64   :  { %1336 = vmatpush3.bf16.msra.mxu1 %v1401_v11  ;;  %v1430_v11 = vld [vmem:[%s1954_s8 + $0x30] ss:$12 sps:$4 sm:$0xff]  }
  0x65   :  { %354 = vmatprep.subr.bf16.mxu1 %v1404_v12  ;;  %v1435_v12 = vld [vmem:[%s1954_s8 + $0x4c] ss:$12 sps:$4 sm:$0xff]  }
  0x66   :  { %1305 = vmatpush3.bf16.msra.mxu0 %v1413_v28  ;;  %v1436_v28 = vld [vmem:[%s1954_s8 + $0x8] ss:$12 sps:$4 sm:$0xff]  }
  0x67   :  { %1338 = vmatmul.mubr.msk.bf16.vlgmr.msra.gmra.mrb[4].mxu1 %vm186_vm3, %v128_v3  ;;  %1306 = vmatprep.subr.bf16.mxu0 %v1414_v29 }
  0x68   :  { %355 = vmatpush1.bf16.msra.mxu1 %v1402_v13  ;;  %386 = vmatprep.mubr.bf16.mxu1 %v1581_v1  ;;  %v1433_v13 = vld [vmem:[%s1954_s8 + $0x48] ss:$12 sps:$4 sm:$0xff]  }
  0x69   :  { %356 = vmatprep.subr.bf16.mxu1 %v1407_v14 }
  0x6a   :  { %1307 = vmatpush3.bf16.msra.mxu0 %v1415_v30  ;;  %v1437_v30 = vld [vmem:[%s1954_s8 + $0x20] ss:$12 sps:$4 sm:$0xff]  }
  0x6b   :  { %1308 = vmatprep.subr.bf16.mxu0 %v1416_v31  ;;  %v1438_v31 = vld [vmem:[%s1954_s8 + $0x38] ss:$12 sps:$4 sm:$0xff]  }
  0x6c   :  { %357 = vmatpush1.bf16.msra.mxu1 %v1405_v15  ;;  %v439_v15 = vld [vmem:[#allocation7] sm:$0xff] }
  0x6d   :  { %665 = vmatprep.subr.bf16.mxu1 %v1426_v6 }
  0x6e   :  { %1309 = vmatpush3.bf16.msra.mxu0 %v1417_v32  ;;  %v1439_v32 = vld [vmem:[%s1954_s8 + $0x50] ss:$12 sps:$4 sm:$0xff]  }
  0x6f   :  { %1310 = vmatprep.subr.bf16.mxu0 %v1418_v33  ;;  %v1440_v33 = vld [vmem:[#allocation10] sm:$0xff]  }
  0x72   :  { %1311 = vmatpush3.bf16.msra.mxu0 %v1419_v34 }
  0x73   :  { %1312 = vmatprep.subr.bf16.mxu0 %v1420_v50 }
  0x76   :  { %1313 = vmatpush3.bf16.msra.mxu0 %v1421_v51 }
  0x77   :  { %1314 = vmatprep.subr.bf16.mxu0 %v1422_v52  ;;  %v1441_v52 = vld [vmem:[#allocation10 + $0x8] sm:$0xff]  }
  0x7a   :  { %1315 = vmatpush3.bf16.msra.mxu0 %v1423_v53 }
 0x130   :  { %v319_v35 = vpop.f32.mrb[0].mxu0 }
 0x131   :  { %v1345_v36 = vpop.f32.mrb[1].mxu0 }
 0x132   :  { %v322_v37 = vpop.f32.mrb[2].mxu0  ;;  %v1806_v40 = vpop.f32.mrb[0].mxu1 }
 0x133   :  { %v326_v38 = vpack.c.bf16 %v322_v37, %v319_v35  ;;  %v1346_v39 = vpop.f32.mrb[3].mxu0  ;;  %v226_v41 = vpop.f32.mrb[1].mxu1 }
 0x134   :  { %v1809_v42 = vadd.f32 %v226_v41, %v146_v26  ;;  %v228_v43 = vpop.f32.mrb[2].mxu1  ;;  %v141_v41 = vsub.s32 0, %v1767_v19 }
 0x135   :  { %1250 = vmatmul.mubr.msk.bf16.vlgmr.msra.gmra.mrb[8].mxu1 %vm186_vm3, %v326_v38  ;;  %v229_v44 = vpop.f32.mrb[3].mxu1 }
 0x136   :  { %697 = vmatprep.mubr.bf16.mxu1 %v1581_v1  ;;  %666 = vmatpush1.bf16.msra.mxu1 %v1424_v7 }
 0x137   :  { %667 = vmatprep.subr.bf16.mxu1 %v1429_v8 }
 0x13a   :  { %v265_v45 = vpop.f32.mrb[4].mxu1  ;;  %668 = vmatpush1.bf16.msra.mxu1 %v1427_v9 }
 0x13b   :  { %v1811_v46 = vadd.f32 %v265_v45, %v150_v27  ;;  %v1339_v47 = vpop.f32.mrb[5].mxu1  ;;  %669 = vmatprep.subr.bf16.mxu1 %v1432_v10 }
 0x13c   :  { %v268_v48 = vpop.f32.mrb[6].mxu1 }
 0x13d   :  { %v1340_v49 = vpop.f32.mrb[7].mxu1 }
 0x13e   :  { %670 = vmatpush1.bf16.msra.mxu1 %v1430_v11 }
 0x13f   :  { %671 = vmatprep.subr.bf16.mxu1 %v1435_v12 }
 0x142   :  { %672 = vmatpush1.bf16.msra.mxu1 %v1433_v13 }
 0x143   :  { %1347 = vmatprep.subr.bf16.mxu1 %v1579_v0 }
 0x208   :  { %v388_v54 = vpop.f32.mrb[8].mxu1 }
 0x209   :  { %v390_v57 = vpop.f32.mrb[9].mxu1  ;;  %v401_v61 = vmul.f32 %v397_v55, %v388_v54 }
 0x20a   :  { %v392_v60 = vpop.f32.mrb[10].mxu1  ;;  %v402_v2 = vmul.f32 %v398_v58, %v390_v57 }
 0x20b   :  { %v403_v62 = vmul.f32 %v399_v56, %v392_v60  ;;  %v394_v63 = vpop.f32.mrb[11].mxu1 }
 0x20c   :  { %v404_v3 = vmul.f32 %v400_v59, %v394_v63 }
 0x20d   :  { %v405_v4 = vpack.c.bf16 %v403_v62, %v401_v61 }
 0x20e   :  { %v406_v5 = vpack.c.bf16 %v404_v3, %v402_v2 }
 0x210   :  { %569 = vmatprep.mubr.bf16.mxu0 %v406_v5 }
 0x211   :  { %570 = vmatmul.mubr.bf16.vlgmr.msra.gmra.mrb[4].mxu0 %v405_v4 }
 0x212   :  { %1367 = vmatprep.mubr.msk.bf16.mxu0 %vm767_vm5, %v1440_v33 }
 0x2e4   :  { %v1316_v14 = vpop.f32.mrb[4].mxu0 }
 0x2e5   :  { %v1317_v16 = vpop.f32.mrb[5].mxu0 }
 0x2e6   :  { %v1318_v17 = vadd.f32 %v1317_v16, %v1316_v14  ;;  %v1319_v18 = vpop.f32.mrb[6].mxu0 }
 0x2e7   :  { %v1320_v22 = vpop.f32.mrb[7].mxu0 }
 0x2e8   :  { %v572_v23 = vadd.f32 %v1318_v17, %v439_v15  ;;  %v1321_v24 = vadd.f32 %v1320_v22, %v1319_v18 }
 0x2ea   :  { %v575_v25 = vadd.f32 %v1321_v24, %v440_v21  ;;  %1442 = vtanh.f32 %v572_v23 }
 0x2ec   :  { %1444 = vtanh.f32 %v575_v25 }
 0x2f4   :  { %v1443_v26 = vpop.eup %1442 }
 0x2f6   :  { %v1445_v27 = vpop.eup %1444 }
 0x2f7   :  { %v596_v29 = vpack.c.bf16 %v1445_v27, %v1443_v26 }
 0x2f9   :  { %1279 = vmatmul.mubr.msk.bf16.vlgmr.msra.gmra.mrb[12].mxu1 %vm661_vm4, %v596_v29 }
 0x2fa   :  { %1348 = vmatpush3.bf16.msra.mxu1 %v1436_v28  ;;  %1355 = vmatprep.mubr.msk.bf16.mxu1 %vm1580_vm0, %v1579_v0 }
 0x2fb   :  { %1349 = vmatprep.subr.bf16.mxu1 %v1579_v0 }
 0x2fe   :  { %1350 = vmatpush3.bf16.msra.mxu1 %v1437_v30 }
 0x2ff   :  { %1351 = vmatprep.subr.bf16.mxu1 %v1579_v0 }
 0x302   :  { %1352 = vmatpush3.bf16.msra.mxu1 %v1438_v31 }
 0x303   :  { %1353 = vmatprep.subr.bf16.mxu1 %v1579_v0  ;;  %v142_v0 = vrot.slane %v1769_v20, %v141_v41 }
 0x305   :  { %v225_v44 = vadd.f32 %v1806_v40, %v142_v0 }
 0x306   :  { %1354 = vmatpush3.bf16.msra.mxu1 %v1439_v32 }
 0x307   :  { %v756_v50 = vpack.c.bf16 %v225_v44, %v225_v44 }
 0x309   :  { %1356 = vmatmul.mubr.msk.bf16.vlgmr.msra.gmra.mrb[16].mxu1 %vm661_vm4, %v596_v29  ;;  %v775_v51 = vsel %vm282_vm1, %v756_v50, 0 }
 0x3cc   :  { %v699_v34 = vpop.f32.mrb[12].mxu1 }
 0x3cd   :  { %v701_v35 = vpop.f32.mrb[13].mxu1 }
 0x3ce   :  { %v703_v36 = vpop.f32.mrb[14].mxu1 }
 0x3cf   :  { %v753_v37 = vpack.c.bf16 %v703_v36, %v699_v34  ;;  %v705_v38 = vpop.f32.mrb[15].mxu1 }
 0x3d0   :  { %v754_v39 = vpack.c.bf16 %v705_v38, %v701_v35 }
 0x3d1   :  { %1359 = vmatprep.subr.bf16.mxu0 %v753_v37 }
 0x3d2   :  { %1360 = vmatpush3.bf16.msra.mxu0 %v753_v37 }
 0x3d3   :  { %1361 = vmatprep.subr.bf16.mxu0 %v754_v39 }
 0x3d6   :  { %1362 = vmatpush3.bf16.msra.mxu0 %v754_v39 }
 0x3dc   :  { %v742_v43 = vpop.f32.mrb[16].mxu1 }
 0x3dd   :  { %v1357_v45 = vpop.f32.mrb[17].mxu1 }
 0x3de   :  { %v745_v47 = vpop.f32.mrb[18].mxu1 }
 0x3df   :  { %v755_v48 = vpack.c.bf16 %v745_v47, %v742_v43  ;;  %v1358_v49 = vpop.f32.mrb[19].mxu1 }
 0x3e1   :  { %1363 = vmatprep.subr.bf16.mxu0 %v755_v48 }
 0x3e2   :  { %1364 = vmatpush3.bf16.msra.mxu0 %v755_v48 }
 0x3e3   :  { %1371 = vmatprep.subr.msk.bf16.mxu0 %vm282_vm1, %v756_v50 }
 0x3e6   :  { %1366 = vmatpush3.bf16.msra.mxu0 %v775_v51 }
 0x3e9   :  { %1368 = vmatmul.mubr.msk.bf16.vlgmr.msra.gmra.mrb[8].mxu0 %vm767_vm5, %v1441_v52 }
 0x4bc   :  { %v1886_v19 = vpop.f32.mrb[8].mxu0 }
 0x4bd   :  { %v828_v20 = vmax.f32 %v1886_v19, 0.0  ;;  %v1889_v40 = vpop.f32.mrb[9].mxu0 }
 0x4be   :  { %v826_v53 = vmax.f32 %v1889_v40, 0.0  ;;  %v1892_v54 = vpop.f32.mrb[10].mxu0 }
 0x4bf   :  { %v829_v55 = vmax.f32 %v1892_v54, 0.0  ;;  %v1895_v56 = vpop.f32.mrb[11].mxu0 }
 0x4c0   :  { %v827_v57 = vmax.f32 %v1895_v56, 0.0 }
 0x4c1   :  { %1566 = dma.done.wait [#allocation3], 6144 }
 0x4c2   :  { %1567 = vsyncadd [#allocation3], 4294961152  ;;  %916 = vmatprep.mubr.bf16.mxu1 %v1581_v1  ;;  %969 = vmatprep.mubr.bf16.mxu0 %v1581_v1  ;;  %v835_v58 = vld [vmem:[#allocation2 + $0x8] sm:$0xff]  ;;  %v834_v59 = vld [vmem:[#allocation2] sm:$0xff]  ;;  %v882_v30 = vpack.c.bf16 %v827_v57, %v826_v53  ;;  %v883_v36 = vpack.c.bf16 %v829_v55, %v828_v20  ;;  %vm1085_vm6 = vcmask 801792  }
 0x4c3   :  { %v841_v60 = vld [vmem:[#allocation2 + $0x38] sm:$0xff]  ;;  %884 = vmatprep.subr.bf16.mxu1 %v835_v58  ;;  %v840_v61 = vld [vmem:[#allocation2 + $0x30] sm:$0xff]  ;;  %v847_v63 = vld [vmem:[#allocation2 + $0x68] sm:$0xff] }
 0x4c4   :  { %885 = vmatpush1.bf16.msra.mxu1 %v834_v59  ;;  %v837_v62 = vld [vmem:[#allocation2 + $0x18] sm:$0xff]  ;;  %v836_v2 = vld [vmem:[#allocation2 + $0x10] sm:$0xff]  ;;  %v843_v3 = vld [vmem:[#allocation2 + $0x48] sm:$0xff] }
 0x4c5   :  { %886 = vmatprep.subr.bf16.mxu1 %v841_v60  ;;  %937 = vmatprep.subr.bf16.mxu0 %v837_v62  ;;  %v842_v4 = vld [vmem:[#allocation2 + $0x40] sm:$0xff]  ;;  %v849_v6 = vld [vmem:[#allocation2 + $0x78] sm:$0xff]  ;;  %v848_v8 = vld [vmem:[#allocation2 + $0x70] sm:$0xff] }
 0x4c6   :  { %938 = vmatpush1.bf16.msra.mxu0 %v836_v2  ;;  %v846_v5 = vld [vmem:[#allocation2 + $0x60] sm:$0xff]  ;;  %v853_v7 = vld [vmem:[#allocation2 + $0x98] sm:$0xff]  ;;  %v852_v9 = vld [vmem:[#allocation2 + $0x90] sm:$0xff] }
 0x4c7   :  { %939 = vmatprep.subr.bf16.mxu0 %v843_v3  ;;  %v855_v10 = vld [vmem:[#allocation2 + $0xa8] sm:$0xff]  ;;  %v854_v12 = vld [vmem:[#allocation2 + $0xa0] sm:$0xff]  ;;  %v865_v14 = vld [vmem:[#allocation2 + $0xf8] sm:$0xff] }
 0x4c8   :  { %887 = vmatpush1.bf16.msra.mxu1 %v840_v61  ;;  %v859_v11 = vld [vmem:[#allocation2 + $0xc8] sm:$0xff]  ;;  %v858_v13 = vld [vmem:[#allocation2 + $0xc0] sm:$0xff]  ;;  %v861_v15 = vld [vmem:[#allocation2 + $0xd8] sm:$0xff] }
 0x4c9   :  { %888 = vmatprep.subr.bf16.mxu1 %v847_v63  ;;  %v860_v16 = vld [vmem:[#allocation2 + $0xd0] sm:$0xff]  ;;  %v867_v18 = vld [vmem:[#allocation2 + $0x108] sm:$0xff]  ;;  %v866_v22 = vld [vmem:[#allocation2 + $0x100] sm:$0xff] }
 0x4ca   :  { %940 = vmatpush1.bf16.msra.mxu0 %v842_v4  ;;  %v864_v17 = vld [vmem:[#allocation2 + $0xf0] sm:$0xff]  ;;  %v871_v21 = vld [vmem:[#allocation2 + $0x128] sm:$0xff]  ;;  %v870_v23 = vld [vmem:[#allocation2 + $0x120] sm:$0xff] }
 0x4cb   :  { %941 = vmatprep.subr.bf16.mxu0 %v849_v6  ;;  %v873_v24 = vld [vmem:[#allocation2 + $0x138] sm:$0xff]  ;;  %v872_v26 = vld [vmem:[#allocation2 + $0x130] sm:$0xff]  ;;  %v879_v28 = vld [vmem:[#allocation2 + $0x168] sm:$0xff] }
 0x4cc   :  { %889 = vmatpush1.bf16.msra.mxu1 %v846_v5  ;;  %v877_v25 = vld [vmem:[#allocation2 + $0x158] sm:$0xff]  ;;  %v876_v27 = vld [vmem:[#allocation2 + $0x150] sm:$0xff]  ;;  %v839_v29 = vld [vmem:[#allocation2 + $0x28] sm:$0xff] }
 0x4cd   :  { %890 = vmatprep.subr.bf16.mxu1 %v853_v7  ;;  %v878_v31 = vld [vmem:[#allocation2 + $0x160] sm:$0xff]  ;;  %v845_v33 = vld [vmem:[#allocation2 + $0x58] sm:$0xff]  ;;  %v844_v34 = vld [vmem:[#allocation2 + $0x50] sm:$0xff] }
 0x4ce   :  { %942 = vmatpush1.bf16.msra.mxu0 %v848_v8  ;;  %v838_v32 = vld [vmem:[#allocation2 + $0x20] sm:$0xff]  ;;  %v851_v35 = vld [vmem:[#allocation2 + $0x88] sm:$0xff]  ;;  %v857_v38 = vld [vmem:[#allocation2 + $0xb8] sm:$0xff] }
 0x4cf   :  { %943 = vmatprep.subr.bf16.mxu0 %v855_v10  ;;  %v850_v37 = vld [vmem:[#allocation2 + $0x80] sm:$0xff]  ;;  %v856_v39 = vld [vmem:[#allocation2 + $0xb0] sm:$0xff]  ;;  %v863_v41 = vld [vmem:[#allocation2 + $0xe8] sm:$0xff] }
 0x4d0   :  { %891 = vmatpush1.bf16.msra.mxu1 %v852_v9  ;;  %v862_v0 = vld [vmem:[#allocation2 + $0xe0] sm:$0xff]  ;;  %v869_v43 = vld [vmem:[#allocation2 + $0x118] sm:$0xff]  ;;  %v868_v44 = vld [vmem:[#allocation2 + $0x110] sm:$0xff] }
 0x4d1   :  { %892 = vmatprep.subr.bf16.mxu1 %v859_v11  ;;  %v875_v45 = vld [vmem:[#allocation2 + $0x148] sm:$0xff]  ;;  %v874_v47 = vld [vmem:[#allocation2 + $0x140] sm:$0xff]  ;;  %v881_v48 = vld [vmem:[#allocation2 + $0x178] sm:$0xff] }
 0x4d2   :  { %944 = vmatpush1.bf16.msra.mxu0 %v854_v12  ;;  %v880_v49 = vld [vmem:[#allocation2 + $0x170] sm:$0xff] }
 0x4d3   :  { %945 = vmatprep.subr.bf16.mxu0 %v861_v15 }
 0x4d4   :  { %893 = vmatpush1.bf16.msra.mxu1 %v858_v13 }
 0x4d5   :  { %894 = vmatprep.subr.bf16.mxu1 %v865_v14 }
 0x4d6   :  { %946 = vmatpush1.bf16.msra.mxu0 %v860_v16 }
 0x4d7   :  { %947 = vmatprep.subr.bf16.mxu0 %v867_v18 }
 0x4d8   :  { %895 = vmatpush1.bf16.msra.mxu1 %v864_v17 }
 0x4d9   :  { %896 = vmatprep.subr.bf16.mxu1 %v871_v21 }
 0x4da   :  { %948 = vmatpush1.bf16.msra.mxu0 %v866_v22 }
 0x4db   :  { %949 = vmatprep.subr.bf16.mxu0 %v873_v24  ;;  %v1063_v24 = vpack.c.bf16 %v1809_v42, %v1809_v42  ;;  %v1448_v42 = vld [vmem:[%s1957_s11 + $0x10] sm:$0xff]  }
 0x4dc   :  { %897 = vmatpush1.bf16.msra.mxu1 %v870_v23  ;;  %v1064_v23 = vpack.c.bf16 %v1811_v46, %v1811_v46  ;;  %v1447_v46 = vld [vmem:[%s1957_s11 + $0x8] sm:$0xff]  }
 0x4dd   :  { %898 = vmatprep.subr.bf16.mxu1 %v877_v25  ;;  %v1099_v25 = vsel %vm282_vm1, %v1063_v24, 0 }
 0x4de   :  { %950 = vmatpush1.bf16.msra.mxu0 %v872_v26  ;;  %v1446_v26 = vld [vmem:[%s1957_s11] sm:$0xff]  }
 0x4df   :  { %951 = vmatprep.subr.bf16.mxu0 %v879_v28 }
 0x4e0   :  { %899 = vmatpush1.bf16.msra.mxu1 %v876_v27  ;;  %v1449_v27 = vld [vmem:[%s1957_s11 + $0x18] sm:$0xff]   ;;  %s1588_s11 = smov [#allocation12]  }
 0x4e1   :  { %990 = vmatprep.subr.bf16.mxu1 %v839_v29  ;;  %s1214_s1 = sshll.u32 %s1588_s11, 4  ;;  %s1215_s1 = int_to_ptr.vmem [resolvable:$true] %s1214_s1 }
 0x4e2   :  { %952 = vmatpush1.bf16.msra.mxu0 %v878_v31  ;;  %s1538_s3 = scalar_lea.vmem %s1215_s1, 2048  ;;  %p1543_p5 = scmp.lt.s32.totalorder %s1215_s1, %s1215_s1 }
 0x4e3   :  { %917 = vmatmul.mubr.bf16.vlgmr.msra.gmra.mrb[20].mxu1 %v882_v30  ;;  %p1539_p4 = scmp.ne.s32.totalorder %s1215_s1, %s1538_s3  ;;  %p1544_p6 = scmp.lt.s32.totalorder %s1538_s3, %s1538_s3 }
 0x4e4   :  { %991 = vmatpush1.bf16.msra.mxu1 %v838_v32  ;;  %926 = vmatprep.mubr.bf16.mxu1 %v1581_v1 }
 0x4e5   :  { %992 = vmatprep.subr.bf16.mxu1 %v845_v33  ;;  %970 = vmatmul.mubr.bf16.vlgmr.msra.gmra.mrb[12].mxu0 %v882_v30  ;;  %p1545_p7 = por %p1544_p6, %p1543_p5 }
 0x4e6   :  { %979 = vmatprep.mubr.bf16.mxu0 %v1581_v1 }
 0x4e7   :  { %p1546_p8 = pnand %p1545_p7, %p1539_p4 }
 0x4e8   :  { %993 = vmatpush1.bf16.msra.mxu1 %v844_v34 }
 0x4e9   :  { %994 = vmatprep.subr.bf16.mxu1 %v851_v35 }
 0x4eb   :  { %927 = vmatmul.mubr.bf16.gmra.mrb[24].mxu1 %v883_v36 }
 0x4ec   :  { %995 = vmatpush1.bf16.msra.mxu1 %v850_v37  ;;  %1022 = vmatprep.mubr.bf16.mxu1 %v1581_v1 }
 0x4ed   :  { %996 = vmatprep.subr.bf16.mxu1 %v857_v38  ;;  %980 = vmatmul.mubr.bf16.gmra.mrb[16].mxu0 %v883_v36 }
 0x4ee   :  { %1136 = vmatprep.mubr.bf16.mxu0 %v1581_v1 }
 0x4f0   :  { %997 = vmatpush1.bf16.msra.mxu1 %v856_v39 }
 0x4f1   :  { %998 = vmatprep.subr.bf16.mxu1 %v863_v41 }
 0x4f4   :  { %999 = vmatpush1.bf16.msra.mxu1 %v862_v0 }
 0x4f5   :  { %1000 = vmatprep.subr.bf16.mxu1 %v869_v43 }
 0x4f8   :  { %1001 = vmatpush1.bf16.msra.mxu1 %v868_v44 }
 0x4f9   :  { %1002 = vmatprep.subr.bf16.mxu1 %v875_v45 }
 0x4fc   :  { %1003 = vmatpush1.bf16.msra.mxu1 %v874_v47 }
 0x4fd   :  { %1004 = vmatprep.subr.bf16.mxu1 %v881_v48 }
 0x500   :  { %1005 = vmatpush1.bf16.msra.mxu1 %v880_v49 }
 0x503   :  { %1023 = vmatmul.mubr.bf16.vlgmr.msra.gmra.mrb[28].mxu1 %v882_v30 }
 0x504   :  { %1032 = vmatprep.mubr.bf16.mxu1 %v1581_v1 }
 0x50b   :  { %1033 = vmatmul.mubr.bf16.gmra.mrb[32].mxu1 %v883_v36 }
 0x5b6   :  { %v918_v50 = vpop.f32.mrb[20].mxu1 }
 0x5b7   :  { %v920_v51 = vpop.f32.mrb[21].mxu1 }
 0x5b8   :  { %v922_v52 = vpop.f32.mrb[22].mxu1  ;;  %v971_v40 = vpop.f32.mrb[12].mxu0 }
 0x5b9   :  { %v1051_v19 = vpack.c.bf16 %v922_v52, %v918_v50  ;;  %v924_v20 = vpop.f32.mrb[23].mxu1  ;;  %v973_v54 = vpop.f32.mrb[13].mxu0 }
 0x5ba   :  { %v1052_v53 = vpack.c.bf16 %v924_v20, %v920_v51  ;;  %v975_v55 = vpop.f32.mrb[14].mxu0 }
 0x5bb   :  { %v1055_v56 = vpack.c.bf16 %v975_v55, %v971_v40  ;;  %v977_v57 = vpop.f32.mrb[15].mxu0 }
 0x5bc   :  { %1104 = vmatprep.subr.bf16.mxu0 %v1052_v53  ;;  %v1056_v58 = vpack.c.bf16 %v977_v57, %v973_v54 }
 0x5bd   :  { %1105 = vmatpush1.bf16.msra.mxu0 %v1051_v19 }
 0x5be   :  { %v928_v59 = vpop.f32.mrb[24].mxu1 }
 0x5bf   :  { %v930_v60 = vpop.f32.mrb[25].mxu1 }
 0x5c0   :  { %v932_v61 = vpop.f32.mrb[26].mxu1  ;;  %v981_v2 = vpop.f32.mrb[16].mxu0 }
 0x5c1   :  { %v1053_v62 = vpack.c.bf16 %v932_v61, %v928_v59  ;;  %v934_v63 = vpop.f32.mrb[27].mxu1  ;;  %v983_v4 = vpop.f32.mrb[17].mxu0 }
 0x5c2   :  { %v1054_v3 = vpack.c.bf16 %v934_v63, %v930_v60  ;;  %v985_v5 = vpop.f32.mrb[18].mxu0 }
 0x5c3   :  { %v1057_v6 = vpack.c.bf16 %v985_v5, %v981_v2  ;;  %v987_v7 = vpop.f32.mrb[19].mxu0 }
 0x5c4   :  { %1106 = vmatprep.subr.bf16.mxu0 %v1054_v3  ;;  %v1058_v8 = vpack.c.bf16 %v987_v7, %v983_v4 }
 0x5c5   :  { %1107 = vmatpush1.bf16.msra.mxu0 %v1053_v62 }
 0x5c6   :  { %1108 = vmatprep.subr.bf16.mxu0 %v1056_v58 }
 0x5c9   :  { %1109 = vmatpush1.bf16.msra.mxu0 %v1055_v56 }
 0x5ca   :  { %1110 = vmatprep.subr.bf16.mxu0 %v1058_v8 }
 0x5cd   :  { %1111 = vmatpush1.bf16.msra.mxu0 %v1057_v6 }
 0x5d6   :  { %v1024_v9 = vpop.f32.mrb[28].mxu1 }
 0x5d7   :  { %v1026_v10 = vpop.f32.mrb[29].mxu1 }
 0x5d8   :  { %v1028_v11 = vpop.f32.mrb[30].mxu1 }
 0x5d9   :  { %v1059_v12 = vpack.c.bf16 %v1028_v11, %v1024_v9  ;;  %v1030_v13 = vpop.f32.mrb[31].mxu1 }
 0x5da   :  { %v1060_v14 = vpack.c.bf16 %v1030_v13, %v1026_v10 }
 0x5dc   :  { %1112 = vmatprep.subr.bf16.mxu0 %v1060_v14 }
 0x5dd   :  { %1113 = vmatpush1.bf16.msra.mxu0 %v1059_v12 }
 0x5de   :  { %v1034_v15 = vpop.f32.mrb[32].mxu1 }
 0x5df   :  { %v1036_v16 = vpop.f32.mrb[33].mxu1 }
 0x5e0   :  { %v1038_v17 = vpop.f32.mrb[34].mxu1 }
 0x5e1   :  { %v1061_v18 = vpack.c.bf16 %v1038_v17, %v1034_v15  ;;  %v1040_v21 = vpop.f32.mrb[35].mxu1 }
 0x5e2   :  { %v1062_v22 = vpack.c.bf16 %v1040_v21, %v1036_v16 }
 0x5e4   :  { %1114 = vmatprep.subr.bf16.mxu0 %v1062_v22 }
 0x5e5   :  { %1115 = vmatpush1.bf16.msra.mxu0 %v1061_v18 }
 0x5e6   :  { %1289 = vmatprep.subr.msk.bf16.mxu0 %vm282_vm1, %v1064_v23 }
 0x5e9   :  { %1117 = vmatpush1.bf16.msra.mxu0 %v1099_v25 }
 0x5ec   :  { %1290 = vmatmul.mubr.msk.bf16.vlgmr.msra.gmra.mrb[20].mxu0 %vm1085_vm6, %v1446_v26 }
 0x5ed   :  { %1146 = vmatprep.mubr.bf16.mxu0 %v1581_v1 }
 0x5f4   :  { %1291 = vmatmul.mubr.msk.bf16.gmra.mrb[24].mxu0 %vm1085_vm6, %v1447_v46 }
 0x5f5   :  { %1156 = vmatprep.mubr.bf16.mxu0 %v1581_v1 }
 0x5fc   :  { %1292 = vmatmul.mubr.msk.bf16.gmra.mrb[28].mxu0 %vm1085_vm6, %v1448_v42 }
 0x5fd   :  { %1166 = vmatprep.mubr.bf16.mxu0 %v1581_v1 }
 0x604   :  { %1293 = vmatmul.mubr.msk.bf16.gmra.mrb[32].mxu0 %vm1085_vm6, %v1449_v27 }
 0x6bf   :  { %v1138_v28 = vpop.f32.mrb[20].mxu0 }
 0x6c0   :  { %v1177_v29 = vmax.f32 %v1138_v28, 0.0  ;;  %v1140_v30 = vpop.f32.mrb[21].mxu0 }
 0x6c1   :  { %v1178_v31 = vmax.f32 %v1140_v30, 0.0  ;;  %v1142_v32 = vpop.f32.mrb[22].mxu0 }
 0x6c2   :  { %1193 = vst [vmem:[#allocation12] sm:$0xff] %v1177_v29  ;;  %v1179_v33 = vmax.f32 %v1142_v32, 0.0  ;;  %v1144_v34 = vpop.f32.mrb[23].mxu0 }
 0x6c3   :  { %1194 = vst [vmem:[#allocation12 + $0x8] sm:$0xff] %v1178_v31  ;;  %v1180_v35 = vmax.f32 %v1144_v34, 0.0 }
 0x6c4   :  { %1195 = vst [vmem:[#allocation12 + $0x10] sm:$0xff] %v1179_v33 }
 0x6c5   :  { %1196 = vst [vmem:[#allocation12 + $0x18] sm:$0xff] %v1180_v35 }
 0x6c7   :  { %v1148_v36 = vpop.f32.mrb[24].mxu0 }
 0x6c8   :  { %v1181_v37 = vmax.f32 %v1148_v36, 0.0  ;;  %v1150_v1 = vpop.f32.mrb[25].mxu0 }
 0x6c9   :  { %v1182_v38 = vmax.f32 %v1150_v1, 0.0  ;;  %v1152_v39 = vpop.f32.mrb[26].mxu0 }
 0x6ca   :  { %1197 = vst [vmem:[#allocation12 + $0x20] sm:$0xff] %v1181_v37  ;;  %v1183_v41 = vmax.f32 %v1152_v39, 0.0  ;;  %v1154_v0 = vpop.f32.mrb[27].mxu0 }
 0x6cb   :  { %1198 = vst [vmem:[#allocation12 + $0x28] sm:$0xff] %v1182_v38  ;;  %v1184_v43 = vmax.f32 %v1154_v0, 0.0 }
 0x6cc   :  { %1199 = vst [vmem:[#allocation12 + $0x30] sm:$0xff] %v1183_v41 }
 0x6cd   :  { %1200 = vst [vmem:[#allocation12 + $0x38] sm:$0xff] %v1184_v43 }
 0x6cf   :  { %v1158_v44 = vpop.f32.mrb[28].mxu0 }
 0x6d0   :  { %v1185_v45 = vmax.f32 %v1158_v44, 0.0  ;;  %v1160_v47 = vpop.f32.mrb[29].mxu0 }
 0x6d1   :  { %v1186_v48 = vmax.f32 %v1160_v47, 0.0  ;;  %v1162_v49 = vpop.f32.mrb[30].mxu0 }
 0x6d2   :  { %1201 = vst [vmem:[#allocation12 + $0x40] sm:$0xff] %v1185_v45  ;;  %v1187_v50 = vmax.f32 %v1162_v49, 0.0  ;;  %v1164_v51 = vpop.f32.mrb[31].mxu0 }
 0x6d3   :  { %1202 = vst [vmem:[#allocation12 + $0x48] sm:$0xff] %v1186_v48  ;;  %v1188_v52 = vmax.f32 %v1164_v51, 0.0 }
 0x6d4   :  { %1203 = vst [vmem:[#allocation12 + $0x50] sm:$0xff] %v1187_v50 }
 0x6d5   :  { %1204 = vst [vmem:[#allocation12 + $0x58] sm:$0xff] %v1188_v52 }
 0x6d7   :  { %v1168_v19 = vpop.f32.mrb[32].mxu0 }
 0x6d8   :  { %v1189_v20 = vmax.f32 %v1168_v19, 0.0  ;;  %v1170_v40 = vpop.f32.mrb[33].mxu0 }
 0x6d9   :  { %v1190_v53 = vmax.f32 %v1170_v40, 0.0  ;;  %v1172_v54 = vpop.f32.mrb[34].mxu0 }
 0x6da   :  { %1205 = vst [vmem:[#allocation12 + $0x60] sm:$0xff] %v1189_v20  ;;  %v1191_v55 = vmax.f32 %v1172_v54, 0.0  ;;  %v1174_v56 = vpop.f32.mrb[35].mxu0 }
 0x6db   :  { %1206 = vst [vmem:[#allocation12 + $0x68] sm:$0xff] %v1190_v53  ;;  %v1192_v57 = vmax.f32 %v1174_v56, 0.0 }
 0x6dc   :  { %1207 = vst [vmem:[#allocation12 + $0x70] sm:$0xff] %v1191_v55 }
 0x6dd   :  { %1208 = vst [vmem:[#allocation12 + $0x78] sm:$0xff] %v1192_v57 }
 0x6de   :  { %1549 = shalt.err (!%p1546_p8)
}
 0x6df   :  { %s1550_s24 = scalar_lea.hbm %s1958_s12, 2048 }
 0x6e0   :  { %p1551_p9 = scmp.ne.s32.totalorder %s1958_s12, %s1550_s24  ;;  %p1554_p10 = scmp.lt.u32.totalorder %s1550_s24, %s1958_s12 }
 0x6e2   :  { %p1556_p11 = pnand %p1554_p10, %p1551_p9 }
 0x6e4   :  { %1559 = shalt.err (!%p1556_p11)
}
 0x6e5   :  { %s1589_s26 = smov 256   ;;  %s1590_s27 = smov 16  }
 0x6e6   :  { %1220 = dma.vmem_to_hbm [thread:$0]  %s1215_s1, 2048, %s1958_s12, [#allocation6], %s1589_s26, %s1589_s26, %s1590_s27  }
 0x6e7   :  { %1568 = dma.done.wait [#allocation6], 2048  }
 0x6e8   :  { %1569 = vsyncadd [#allocation6], 4294965248 }
 0x6e9   :  { %1224 = vsyncpa [#allocation5], 1 }
 0x6ea   :  { %1225 = vsyncpa [#allocation8], 1 }
 0x6eb   :  { %1226 = vsyncpa [#allocation11], 1 }
 0x6ec   :  { %1227 = vsyncpa [#allocation6], 1 }
 0x6ed   :  { %1228 = vsyncmov [#allocation3] }
 0x6f0   :  { %s1229_s22 = vpop.sfrf %1228 }
 0x6f1   :  { %p1294_p12 = scmp.ne.s32.totalorder %s1229_s22, 0 }
 0x6f3   :  { %1233 = shalt.err (%p1294_p12)  }

</bundles_post_ra>
